<compile_context>
chip_gen: v7x
topology: tpu7x:2x2x1
jax: 0.10.0
libtpu: 0.0.40
codegen_flags: <defaults>
</compile_context>

<pallas_src>
import functools

import jax
import jax.numpy as jnp
from jax.experimental import pallas as pl
from jax.experimental.pallas import tpu as pltpu

LANE = 128


def _head_kernel(x_ref, w1_ref, b1_ref, w2_ref, b2_ref,
                 feat_ref, out_ref, acc_ref, *, hw_total):
    """One (batch_block, hw_block) grid step.

    x_ref   : (nb, C_in, hw_tile) f32  activation tile (HW on lanes)
    w1_ref  : (C_in, C_pad)       f32  1x1-conv weight (backbone stand-in)
    b1_ref  : (1, C_pad)          f32  conv bias (lane row)
    w2_ref  : (1, C_pad)          f32  head Linear weight row
    b2_ref  : (1, 1)              f32  head Linear bias (SMEM scalar)
    feat_ref: (nb, C_pad)         f32  pooled feature output (lane-dense)
    out_ref : (nb, 1)             f32  logits output
    acc_ref : (nb, C_pad)         f32  running spatial-sum accumulator (VMEM scratch)
    """
    hw_i = pl.program_id(1)
    nb = x_ref.shape[0]

    @pl.when(hw_i == 0)
    def _():
        acc_ref[...] = jnp.zeros_like(acc_ref)

    w1 = w1_ref[...]                      # (C_in, C_pad)
    b1 = b1_ref[...]                      # (1, C_pad)

    # Backbone stand-in (1x1 conv + swish) + partial spatial sum for the pool.
    # Per sample: (hw_tile, C_in) @ (C_in, C_pad) keeps C_pad on the lane axis,
    # so pooling is a sublane reduce and no broadcast of the weight is needed.
    partial = []
    for n in range(nb):                   # static unroll, nb is small
        xn = x_ref[n]                     # (C_in, hw_tile)
        hn = jnp.dot(xn.T, w1, preferred_element_type=jnp.float32)  # (hw_tile, C_pad)
        hn = hn + b1
        hn = hn * jax.nn.sigmoid(hn)      # swish (EUP, f32 — safe on all gens)
        partial.append(jnp.sum(hn, axis=0, keepdims=True))          # (1, C_pad)
    acc_ref[...] += jnp.concatenate(partial, axis=0)                 # (nb, C_pad)

    @pl.when(hw_i == pl.num_programs(1) - 1)
    def _():
        # AdaptiveAvgPool2d(1) + flatten.
        feat = acc_ref[...] * (1.0 / hw_total)
        feat_ref[...] = feat.astype(feat_ref.dtype)
        # last_linear: Linear(in_features, 1) on the VPU; padded channels are
        # zero in both feat and w2 so they do not contribute.
        logit = jnp.sum(feat * w2_ref[...], axis=-1, keepdims=True) + b2_ref[0, 0]
        out_ref[...] = logit.astype(out_ref.dtype)


def prepare_params(w1, b1, w2, b2):
    """Pad / reshape the weights ONCE at model-load time (hoisted out of the
    per-call wrapper per the performance review)."""
    C_in, C_feat = w1.shape
    C_pad = ((C_feat + LANE - 1) // LANE) * LANE
    w1p = jnp.zeros((C_in, C_pad), jnp.float32).at[:, :C_feat].set(
        jnp.asarray(w1, jnp.float32))
    b1p = jnp.zeros((1, C_pad), jnp.float32).at[0, :C_feat].set(
        jnp.asarray(b1, jnp.float32).reshape(-1))
    w2p = jnp.zeros((1, C_pad), jnp.float32).at[0, :C_feat].set(
        jnp.asarray(w2, jnp.float32).reshape(-1))
    b2p = jnp.asarray(b2, jnp.float32).reshape(1, 1)
    return dict(w1=w1p, b1=b1p, w2=w2p, b2=b2p, c_feat=C_feat, c_pad=C_pad)


def _pick_hw_tile(hw, max_tile=2048):
    """Largest multiple of 128 (<= max_tile) that divides HW, else full HW."""
    if hw % LANE != 0:
        return hw
    t = min(max_tile, hw)
    t -= t % LANE
    while hw % t:
        t -= LANE
    return t


def get_model_forward(x_nchw, params, *, num_batch_blocks=1):
    """Forward of `get_model`. x_nchw: (N, C_in, H, W) f32.
    Returns (feature (N, C_feat), logits (N, 1))."""
    N, C_in, H, W = x_nchw.shape
    HW = H * W
    C_pad = params["c_pad"]
    C_feat = params["c_feat"]

    # Free reshape of NCHW (no transpose, no dtype pass): HW stays on lanes.
    x = x_nchw.reshape(N, C_in, HW)

    # Batch split: only useful on v7x (2 TCs); blocks must be the full batch
    # or a multiple of 8 rows so output stores stay unmasked full tiles.
    nb, num_blocks = N, 1
    if num_batch_blocks > 1 and N % num_batch_blocks == 0:
        cand = N // num_batch_blocks
        if cand % 8 == 0:
            nb, num_blocks = cand, num_batch_blocks

    hw_tile = _pick_hw_tile(HW)
    hw_blocks = HW // hw_tile

    kernel = functools.partial(_head_kernel, hw_total=HW)

    feat_pad, logits = pl.pallas_call(
        kernel,
        out_shape=(
            jax.ShapeDtypeStruct((N, C_pad), jnp.float32),
            jax.ShapeDtypeStruct((N, 1), jnp.float32),
        ),
        grid_spec=pltpu.PrefetchScalarGridSpec(
            num_scalar_prefetch=0,
            grid=(num_blocks, hw_blocks),
            in_specs=[
                pl.BlockSpec((nb, C_in, hw_tile), lambda b, h: (b, 0, h)),   # x
                pl.BlockSpec((C_in, C_pad), lambda b, h: (0, 0)),            # w1
                pl.BlockSpec((1, C_pad), lambda b, h: (0, 0)),               # b1
                pl.BlockSpec((1, C_pad), lambda b, h: (0, 0)),               # w2
                pl.BlockSpec(memory_space=pltpu.MemorySpace.SMEM),           # b2
            ],
            out_specs=[
                pl.BlockSpec((nb, C_pad), lambda b, h: (b, 0)),              # feat
                pl.BlockSpec((nb, 1), lambda b, h: (b, 0)),                  # logits
            ],
            scratch_shapes=[pltpu.VMEM((nb, C_pad), jnp.float32)],
        ),
        compiler_params=pltpu.CompilerParams(
            dimension_semantics=("parallel", "arbitrary"),
            vmem_limit_bytes=32 * 1024 * 1024,
        ),
    )(x, params["w1"], params["b1"], params["w2"], params["b2"])

    return feat_pad[:, :C_feat], logits


def _reference(x_nchw, w1, b1, w2, b2):
    N, C_in, H, W = x_nchw.shape
    x = x_nchw.reshape(N, C_in, H * W)
    h = jnp.einsum('nch,cf->nhf', x, w1,
                   precision=jax.lax.Precision.HIGHEST) + b1.reshape(1, 1, -1)
    h = h * jax.nn.sigmoid(h)
    feat = jnp.mean(h, axis=1)
    out = feat @ w2 + b2
    return feat, out


if __name__ == "__main__":
    key = jax.random.PRNGKey(0)
    k_x, k_w1, k_b1, k_w2, k_b2 = jax.random.split(key, 5)

    # Small shapes consistent with the module's forward.
    N, C_in, H, W = 2, 4, 16, 16
    C_feat = 32  # stand-in for the backbone's `in_features`

    x = jax.random.normal(k_x, (N, C_in, H, W), dtype=jnp.float32)
    w1 = jax.random.normal(k_w1, (C_in, C_feat), dtype=jnp.float32) * 0.1
    b1 = jax.random.normal(k_b1, (1, C_feat), dtype=jnp.float32) * 0.01
    w2 = jax.random.normal(k_w2, (C_feat, 1), dtype=jnp.float32) * 0.1
    b2 = jax.random.normal(k_b2, (1, 1), dtype=jnp.float32) * 0.01

    params = prepare_params(w1, b1, w2, b2)   # hoisted: built once, not per call
    feat, logits = get_model_forward(x, params)
    jax.block_until_ready((feat, logits))

    feat_ref, logits_ref = _reference(x, w1, b1, w2, b2)
    assert feat.shape == (N, C_feat) and logits.shape == (N, 1)
    assert jnp.allclose(feat, feat_ref, atol=1e-4, rtol=1e-4), float(
        jnp.max(jnp.abs(feat - feat_ref)))
    assert jnp.allclose(logits, logits_ref, atol=1e-4, rtol=1e-4), float(
        jnp.max(jnp.abs(logits - logits_ref)))

    print("KERNEL_OK")
</pallas_src>

<mosaic_0001>
module attributes {stable_mosaic.version = 11 : i64} {
  func.func @_head_kernel(%arg0: i32, %arg1: i32, %arg2: memref<2x4x256xf32, #tpu.memory_space<vmem>>, %arg3: memref<4x128xf32, #tpu.memory_space<vmem>>, %arg4: memref<1x128xf32, #tpu.memory_space<vmem>>, %arg5: memref<1x128xf32, #tpu.memory_space<vmem>>, %arg6: memref<1x1xf32, #tpu.memory_space<smem>>, %arg7: memref<2x128xf32, #tpu.memory_space<vmem>>, %arg8: memref<2x1xf32, #tpu.memory_space<vmem>>, %arg9: memref<2x128xf32, #tpu.memory_space<vmem>>) attributes {dimension_semantics = [#tpu.dimension_semantics<parallel>, #tpu.dimension_semantics<arbitrary>], iteration_bounds = array<i64: 1, 1>, scalar_prefetch = 0 : i64, scratch_operands = 1 : i64, tpu.core_type = #tpu.core_type<tc>, window_params = [{transform_indices = @transform_0, window_bounds = array<i64: 2, 4, 256>}, {pipeline_mode = #tpu.pipeline_mode<synchronous>, transform_indices = @transform_1, window_bounds = array<i64: 4, 128>}, {pipeline_mode = #tpu.pipeline_mode<synchronous>, transform_indices = @transform_2, window_bounds = array<i64: 1, 128>}, {pipeline_mode = #tpu.pipeline_mode<synchronous>, transform_indices = @transform_3, window_bounds = array<i64: 1, 128>}, {transform_indices = @transform_4, window_bounds = array<i64: 1, 1>}, {transform_indices = @transform_5, window_bounds = array<i64: 2, 128>}, {transform_indices = @transform_6, window_bounds = array<i64: 2, 1>}]} {
    %c0_i32 = arith.constant 0 : i32
    %0 = arith.cmpi eq, %arg1, %c0_i32 : i32
    %1 = arith.extui %0 : i1 to i32
    %c0_i32_0 = arith.constant 0 : i32
    %2 = arith.cmpi ne, %1, %c0_i32_0 : i32
    scf.if %2 {
      %cst_20 = arith.constant 0.000000e+00 : f32
      %40 = vector.broadcast %cst_20 : f32 to vector<2x128xf32>
      %c0_21 = arith.constant 0 : index
      %c0_22 = arith.constant 0 : index
      %41 = vector.load %arg9[%c0_21, %c0_22] : memref<2x128xf32, #tpu.memory_space<vmem>>, vector<2x128xf32>
      tpu.vector_store %arg9[%c0_21, %c0_22], %40 {strides = array<i32>} : memref<2x128xf32, #tpu.memory_space<vmem>>, vector<2x128xf32>,
    } else {
    }
    %c0 = arith.constant 0 : index
    %c0_1 = arith.constant 0 : index
    %3 = vector.load %arg3[%c0, %c0_1] : memref<4x128xf32, #tpu.memory_space<vmem>>, vector<4x128xf32>
    %c0_2 = arith.constant 0 : index
    %c0_3 = arith.constant 0 : index
    %4 = vector.load %arg4[%c0_2, %c0_3] : memref<1x128xf32, #tpu.memory_space<vmem>>, vector<1x128xf32>
    %c0_4 = arith.constant 0 : index
    %c0_5 = arith.constant 0 : index
    %c0_6 = arith.constant 0 : index
    %5 = vector.load %arg2[%c0_4, %c0_5, %c0_6] : memref<2x4x256xf32, #tpu.memory_space<vmem>>, vector<1x4x256xf32>
    %6 = vector.shape_cast %5 : vector<1x4x256xf32> to vector<4x256xf32>
    %7 = tpu.transpose %6, [1, 0] : vector<4x256xf32> -> vector<256x4xf32>
    %cst = arith.constant dense<0.000000e+00> : vector<256x128xf32>
    %8 = tpu.matmul %7, %3, %cst {dimension_numbers = #tpu.dot_dimension_numbers<[1], [0], [0], [1], [0, 0, 1, 1], [], []>} : vector<256x4xf32>, vector<4x128xf32>, vector<256x128xf32> -> vector<256x128xf32>
    %9 = vector.broadcast %4 : vector<1x128xf32> to vector<256x128xf32>
    %10 = arith.addf %8, %9 : vector<256x128xf32>
    %11 = arith.negf %10 : vector<256x128xf32>
    %12 = math.exp %11 : vector<256x128xf32>
    %cst_7 = arith.constant 1.000000e+00 : f32
    %13 = vector.broadcast %cst_7 : f32 to vector<256x128xf32>
    %14 = arith.addf %13, %12 : vector<256x128xf32>
    %15 = arith.divf %13, %14 : vector<256x128xf32>
    %16 = arith.mulf %10, %15 : vector<256x128xf32>
    %cst_8 = arith.constant dense<0.000000e+00> : vector<128xf32>
    %17 = vector.multi_reduction <add>, %16, %cst_8 [0] : vector<256x128xf32> to vector<128xf32>
    %18 = vector.shape_cast %17 : vector<128xf32> to vector<1x128xf32>
    %c1 = arith.constant 1 : index
    %c0_9 = arith.constant 0 : index
    %c0_10 = arith.constant 0 : index
    %19 = vector.load %arg2[%c1, %c0_9, %c0_10] : memref<2x4x256xf32, #tpu.memory_space<vmem>>, vector<1x4x256xf32>
    %20 = vector.shape_cast %19 : vector<1x4x256xf32> to vector<4x256xf32>
    %21 = tpu.transpose %20, [1, 0] : vector<4x256xf32> -> vector<256x4xf32>
    %cst_11 = arith.constant dense<0.000000e+00> : vector<256x128xf32>
    %22 = tpu.matmul %21, %3, %cst_11 {dimension_numbers = #tpu.dot_dimension_numbers<[1], [0], [0], [1], [0, 0, 1, 1], [], []>} : vector<256x4xf32>, vector<4x128xf32>, vector<256x128xf32> -> vector<256x128xf32>
    %23 = vector.broadcast %4 : vector<1x128xf32> to vector<256x128xf32>
    %24 = arith.addf %22, %23 : vector<256x128xf32>
    %25 = arith.negf %24 : vector<256x128xf32>
    %26 = math.exp %25 : vector<256x128xf32>
    %cst_12 = arith.constant 1.000000e+00 : f32
    %27 = vector.broadcast %cst_12 : f32 to vector<256x128xf32>
    %28 = arith.addf %27, %26 : vector<256x128xf32>
    %29 = arith.divf %27, %28 : vector<256x128xf32>
    %30 = arith.mulf %24, %29 : vector<256x128xf32>
    %cst_13 = arith.constant dense<0.000000e+00> : vector<128xf32>
    %31 = vector.multi_reduction <add>, %30, %cst_13 [0] : vector<256x128xf32> to vector<128xf32>
    %32 = vector.shape_cast %31 : vector<128xf32> to vector<1x128xf32>
    %c0_14 = arith.constant 0 : index
    %c0_15 = arith.constant 0 : index
    %33 = vector.load %arg9[%c0_14, %c0_15] : memref<2x128xf32, #tpu.memory_space<vmem>>, vector<2x128xf32>
    %34 = tpu.concatenate %18, %32 in 0 : vector<1x128xf32>, vector<1x128xf32> -> vector<2x128xf32>
    %35 = arith.addf %33, %34 : vector<2x128xf32>
    %c0_16 = arith.constant 0 : index
    %c0_17 = arith.constant 0 : index
    %36 = vector.load %arg9[%c0_16, %c0_17] : memref<2x128xf32, #tpu.memory_space<vmem>>, vector<2x128xf32>
    tpu.vector_store %arg9[%c0_16, %c0_17], %35 {strides = array<i32>} : memref<2x128xf32, #tpu.memory_space<vmem>>, vector<2x128xf32>,
    %c0_i32_18 = arith.constant 0 : i32
    %37 = arith.cmpi eq, %arg1, %c0_i32_18 : i32
    %38 = arith.extui %37 : i1 to i32
    %c0_i32_19 = arith.constant 0 : i32
    %39 = arith.cmpi ne, %38, %c0_i32_19 : i32
    scf.if %39 {
      %c0_20 = arith.constant 0 : index
      %c0_21 = arith.constant 0 : index
      %40 = vector.load %arg9[%c0_20, %c0_21] : memref<2x128xf32, #tpu.memory_space<vmem>>, vector<2x128xf32>
      %cst_22 = arith.constant 3.906250e-03 : f32
      %41 = vector.broadcast %cst_22 : f32 to vector<2x128xf32>
      %42 = arith.mulf %40, %41 : vector<2x128xf32>
      %c0_23 = arith.constant 0 : index
      %c0_24 = arith.constant 0 : index
      %43 = vector.load %arg7[%c0_23, %c0_24] : memref<2x128xf32, #tpu.memory_space<vmem>>, vector<2x128xf32>
      tpu.vector_store %arg7[%c0_23, %c0_24], %42 {strides = array<i32>} : memref<2x128xf32, #tpu.memory_space<vmem>>, vector<2x128xf32>,
      %c0_25 = arith.constant 0 : index
      %c0_26 = arith.constant 0 : index
      %44 = vector.load %arg5[%c0_25, %c0_26] : memref<1x128xf32, #tpu.memory_space<vmem>>, vector<1x128xf32>
      %45 = vector.broadcast %44 : vector<1x128xf32> to vector<2x128xf32>
      %46 = arith.mulf %42, %45 : vector<2x128xf32>
      %cst_27 = arith.constant dense<0.000000e+00> : vector<2xf32>
      %47 = vector.multi_reduction <add>, %46, %cst_27 [1] : vector<2x128xf32> to vector<2xf32>
      %48 = vector.shape_cast %47 : vector<2xf32> to vector<2x1xf32>
      %c0_28 = arith.constant 0 : index
      %c0_29 = arith.constant 0 : index
      %49 = memref.load %arg6[%c0_28, %c0_29] : memref<1x1xf32, #tpu.memory_space<smem>>
      %50 = vector.broadcast %49 : f32 to vector<2x1xf32>
      %51 = arith.addf %48, %50 : vector<2x1xf32>
      %c0_30 = arith.constant 0 : index
      %c0_31 = arith.constant 0 : index
      %52 = vector.load %arg8[%c0_30, %c0_31] : memref<2x1xf32, #tpu.memory_space<vmem>>, vector<2x1xf32>
      tpu.vector_store %arg8[%c0_30, %c0_31], %51 {strides = array<i32>} : memref<2x1xf32, #tpu.memory_space<vmem>>, vector<2x1xf32>,
    } else {
    }
    return
  }
  func.func @transform_0(%arg0: i32, %arg1: i32) -> (i32, i32, i32) {
    %c0_i32 = arith.constant 0 : i32
    %c0_i32_0 = arith.constant 0 : i32
    return %arg0, %c0_i32, %arg1 : i32, i32, i32
  }
  func.func @transform_1(%arg0: i32, %arg1: i32) -> (i32, i32) {
    %c0_i32 = arith.constant 0 : i32
    %c0_i32_0 = arith.constant 0 : i32
    %c0_i32_1 = arith.constant 0 : i32
    return %c0_i32, %c0_i32_0 : i32, i32
  }
  func.func @transform_2(%arg0: i32, %arg1: i32) -> (i32, i32) {
    %c0_i32 = arith.constant 0 : i32
    %c0_i32_0 = arith.constant 0 : i32
    %c0_i32_1 = arith.constant 0 : i32
    return %c0_i32, %c0_i32_0 : i32, i32
  }
  func.func @transform_3(%arg0: i32, %arg1: i32) -> (i32, i32) {
    %c0_i32 = arith.constant 0 : i32
    %c0_i32_0 = arith.constant 0 : i32
    %c0_i32_1 = arith.constant 0 : i32
    return %c0_i32, %c0_i32_0 : i32, i32
  }
  func.func @transform_4(%arg0: i32, %arg1: i32) -> (i32, i32) {
    %c0_i32 = arith.constant 0 : i32
    %c0_i32_0 = arith.constant 0 : i32
    %c0_i32_1 = arith.constant 0 : i32
    return %c0_i32, %c0_i32_0 : i32, i32
  }
  func.func @transform_5(%arg0: i32, %arg1: i32) -> (i32, i32) {
    %c0_i32 = arith.constant 0 : i32
    %c0_i32_0 = arith.constant 0 : i32
    return %arg0, %c0_i32 : i32, i32
  }
  func.func @transform_6(%arg0: i32, %arg1: i32) -> (i32, i32) {
    %c0_i32 = arith.constant 0 : i32
    %c0_i32_0 = arith.constant 0 : i32
    return %arg0, %c0_i32 : i32, i32
  }
}

</mosaic_0001>

<bundles_post_ra>
// kernel: tpu_custom_call.1
= control target key start
LH: loop header
LB: loop body
LE: loop exit
PB: predicated region body
PF: predicated region fallthrough
CT: control target
= control target key end

     0   :  { %13 = vsyncpa [#allocation5], 0  ;;  %s2463_s0 = inlined_call_operand.hbm [shape: f32[2,4,256], index: 0, kind: input, shape index: {}]   ;;  %s2464_s1 = inlined_call_operand.vmem [shape: f32[4,128], index: 1, kind: input, shape index: {}]   ;;  %s2465_s2 = inlined_call_operand.vmem [shape: f32[1,128], index: 2, kind: input, shape index: {}]   ;;  %s2466_s3 = inlined_call_operand.vmem [shape: f32[1,128], index: 3, kind: input, shape index: {}]   ;;  %s2467_s4 = inlined_call_operand.<no memory space> [shape: f32[1,1], index: 4, kind: input, shape index: {}]   ;;  %s2468_s5 = inlined_call_operand.hbm [shape: f32[2,128], index: 5, kind: output, shape index: {0}]   ;;  %s2469_s6 = inlined_call_operand.vmem [shape: f32[2,1], index: 6, kind: output, shape index: {1}]  }
   0x1   :  { %14 = vsyncpa [#allocation6], 0  ;;  %s2014_s21 = smov [#allocation4]   ;;  %s1966_s25 = scalar_lea.hbm %s2463_s0, 256 }
   0x2   :  { %s20_s22 = sshll.u32 %s2014_s21, 4  ;;  %p1967_p0 = scmp.ne.s32.totalorder %s2463_s0, %s1966_s25  ;;  %s21_s22 = int_to_ptr.vmem [resolvable:$true] %s20_s22 }
   0x3   :  { %p1970_p1 = scmp.lt.u32.totalorder %s1966_s25, %s2463_s0 }
   0x5   :  { %p1972_p2 = pnand %p1970_p1, %p1967_p0 }
   0x7   :  { %1975 = shalt.err (!%p1972_p2)
}
   0x8   :  { %s1976_s30 = scalar_lea.vmem %s21_s22, 256  ;;  %p1981_p4 = scmp.lt.s32.totalorder %s21_s22, %s21_s22 }
   0x9   :  { %p1977_p3 = scmp.ne.s32.totalorder %s21_s22, %s1976_s30  ;;  %p1982_p5 = scmp.lt.s32.totalorder %s1976_s30, %s1976_s30 }
   0xb   :  { %p1983_p6 = por %p1982_p5, %p1981_p4 }
   0xd   :  { %p1984_p7 = pnand %p1983_p6, %p1977_p3 }
   0xf   :  { %1987 = shalt.err (!%p1984_p7)
}
  0x10   :  { %s2015_s7 = smov 128   ;;  %s2016_s8 = smov 8  }
  0x11   :  { %26 = dma.hbm_to_vmem [thread:$0]  %s2463_s0, 256, %s21_s22, [#allocation5], %s2015_s7, %s2015_s7, %s2016_s8  }
  0x12   :  { %2010 = dma.done.wait [#allocation5], 256  }
  0x13   :  { %2011 = vsyncadd [#allocation5], 4294967040  ;;  %v45_v0 = vld [vmem:[#allocation4] sm:$0xff]  ;;  %vm216_vm0 = vcmask 1043456   ;;  %v707_v3 = vld [vmem:[#allocation4 + $0x8] sm:$0xff]  ;;  %vm119_vm1 = vcmask 31744  }
  0x14   :  { %49 = vxpose.xlu0.b32.start.end [1/1] (short) %v45_v0, 128  ;;  %v47_v1 = vcombine.high %v45_v0, %v45_v0  ;;  %v43_v2 = vld [vmem:[%s2464_s1] sm:$0xf]  ;;  %v709_v4 = vcombine.high %v707_v3, %v707_v3  ;;  %vm1358_vm2 = vcmask 1040384   ;;  %vm1376_vm3 = vcmask 1041408   ;;  %s2018_s16 = smov [#allocation7]  }
  0x15   :  { %1602 = vmatprep.subr.msk.mxu0 %vm216_vm0, %v43_v2  ;;  %1652 = vmatprep.subr.msk.mxu1 %vm216_vm0, %v43_v2  ;;  %s1391_s17 = sshll.u32 %s2018_s16, 4  ;;  %s1392_s17 = int_to_ptr.vmem [resolvable:$true] %s1391_s17 }
  0x16   :  { %81 = vxpose.xlu1.b32.start.end [1/1] (short) %v47_v1, 128  ;;  %1603 = vmatpush3.msk.msra.mxu0 %vm216_vm0, %v43_v2  ;;  %s1988_s18 = scalar_lea.vmem %s1392_s17, 32  ;;  %p1993_p9 = scmp.lt.s32.totalorder %s1392_s17, %s1392_s17 }
  0x17   :  { %1653 = vmatpush3.msk.msra.mxu1 %vm216_vm0, %v43_v2  ;;  %p1989_p8 = scmp.ne.s32.totalorder %s1392_s17, %s1988_s18  ;;  %p1994_p10 = scmp.lt.s32.totalorder %s1988_s18, %s1988_s18 }
  0x19   :  { %p1995_p11 = por %p1994_p10, %p1993_p9 }
  0x1b   :  { %p1996_p12 = pnand %p1995_p11, %p1989_p8 }
  0x51   :  { %711 = vxpose.xlu0.b32.start.end [1/1] (short) %v707_v3, 128 }
  0x53   :  { %743 = vxpose.xlu1.b32.start.end [1/1] (short) %v709_v4, 128 }
  0x94   :  { %v65_v5 = vpop.trf.xlu0 }
  0x95   :  { %1604 = vmatprep.mubr.msk.f32.mxu0 %vm119_vm1, %v65_v5  ;;  %v2136_v5 = vld [vmem:[%s2465_s2] ss:$0 sm:$0xff] }
  0x96   :  { %v97_v6 = vpop.trf.xlu1 }
  0x98   :  { %v66_v7 = vpop.trf.xlu0 }
  0x99   :  { %1605 = vmatmul.mubr.msk.f32.vlgmr.msra.gmra.mrb[0].mxu0 %vm119_vm1, %v66_v7 }
  0x9a   :  { %v98_v8 = vpop.trf.xlu1 }
  0x9c   :  { %v67_v9 = vpop.trf.xlu0 }
  0x9d   :  { %1607 = vmatprep.mubr.msk.f32.mxu0 %vm119_vm1, %v67_v9 }
  0x9e   :  { %v99_v10 = vpop.trf.xlu1 }
  0xa0   :  { %v68_v11 = vpop.trf.xlu0 }
  0xa1   :  { %1608 = vmatmul.mubr.msk.f32.gmra.mrb[2].mxu0 %vm119_vm1, %v68_v11 }
  0xa2   :  { %v100_v12 = vpop.trf.xlu1 }
  0xa4   :  { %v69_v13 = vpop.trf.xlu0 }
  0xa5   :  { %1610 = vmatprep.mubr.msk.f32.mxu0 %vm119_vm1, %v69_v13 }
  0xa6   :  { %v101_v14 = vpop.trf.xlu1 }
  0xa8   :  { %v70_v15 = vpop.trf.xlu0 }
  0xa9   :  { %1611 = vmatmul.mubr.msk.f32.gmra.mrb[4].mxu0 %vm119_vm1, %v70_v15 }
  0xaa   :  { %v102_v16 = vpop.trf.xlu1 }
  0xac   :  { %v71_v17 = vpop.trf.xlu0 }
  0xad   :  { %1613 = vmatprep.mubr.msk.f32.mxu0 %vm119_vm1, %v71_v17 }
  0xae   :  { %v103_v18 = vpop.trf.xlu1 }
  0xb0   :  { %v72_v19 = vpop.trf.xlu0 }
  0xb1   :  { %1614 = vmatmul.mubr.msk.f32.gmra.mrb[6].mxu0 %vm119_vm1, %v72_v19 }
  0xb2   :  { %v104_v20 = vpop.trf.xlu1 }
  0xb4   :  { %v73_v21 = vpop.trf.xlu0 }
  0xb5   :  { %1616 = vmatprep.mubr.msk.f32.mxu0 %vm119_vm1, %v73_v21 }
  0xb6   :  { %v105_v22 = vpop.trf.xlu1 }
  0xb8   :  { %v74_v23 = vpop.trf.xlu0 }
  0xb9   :  { %1617 = vmatmul.mubr.msk.f32.gmra.mrb[8].mxu0 %vm119_vm1, %v74_v23 }
  0xba   :  { %v106_v24 = vpop.trf.xlu1 }
  0xbc   :  { %v75_v25 = vpop.trf.xlu0 }
  0xbd   :  { %1619 = vmatprep.mubr.msk.f32.mxu0 %vm119_vm1, %v75_v25 }
  0xbe   :  { %v107_v26 = vpop.trf.xlu1 }
  0xc0   :  { %v76_v27 = vpop.trf.xlu0 }
  0xc1   :  { %1620 = vmatmul.mubr.msk.f32.gmra.mrb[10].mxu0 %vm119_vm1, %v76_v27 }
  0xc2   :  { %v108_v28 = vpop.trf.xlu1 }
  0xc4   :  { %v77_v29 = vpop.trf.xlu0 }
  0xc5   :  { %1622 = vmatprep.mubr.msk.f32.mxu0 %vm119_vm1, %v77_v29 }
  0xc6   :  { %v109_v30 = vpop.trf.xlu1 }
  0xc8   :  { %v78_v31 = vpop.trf.xlu0 }
  0xc9   :  { %1623 = vmatmul.mubr.msk.f32.gmra.mrb[12].mxu0 %vm119_vm1, %v78_v31 }
  0xca   :  { %v110_v32 = vpop.trf.xlu1 }
  0xcc   :  { %v79_v33 = vpop.trf.xlu0 }
  0xcd   :  { %1625 = vmatprep.mubr.msk.f32.mxu0 %vm119_vm1, %v79_v33 }
  0xce   :  { %v111_v34 = vpop.trf.xlu1 }
  0xd0   :  { %v80_v35 = vpop.trf.xlu0 }
  0xd1   :  { %1626 = vmatmul.mubr.msk.f32.gmra.mrb[14].mxu0 %vm119_vm1, %v80_v35 }
  0xd2   :  { %1628 = vmatprep.mubr.msk.f32.mxu0 %vm119_vm1, %v97_v6  ;;  %v112_v36 = vpop.trf.xlu1 }
  0xd4   :  { %v727_v37 = vpop.trf.xlu0 }
  0xd5   :  { %1629 = vmatmul.mubr.msk.f32.gmra.mrb[16].mxu0 %vm119_vm1, %v98_v8  ;;  %1654 = vmatprep.mubr.msk.f32.mxu1 %vm119_vm1, %v727_v37 }
  0xd6   :  { %1631 = vmatprep.mubr.msk.f32.mxu0 %vm119_vm1, %v99_v10  ;;  %v759_v38 = vpop.trf.xlu1 }
  0xd8   :  { %v728_v39 = vpop.trf.xlu0 }
  0xd9   :  { %1632 = vmatmul.mubr.msk.f32.gmra.mrb[18].mxu0 %vm119_vm1, %v100_v12  ;;  %1655 = vmatmul.mubr.msk.f32.vlgmr.msra.gmra.mrb[0].mxu1 %vm119_vm1, %v728_v39 }
  0xda   :  { %1634 = vmatprep.mubr.msk.f32.mxu0 %vm119_vm1, %v101_v14  ;;  %v760_v40 = vpop.trf.xlu1 }
  0xdc   :  { %v729_v41 = vpop.trf.xlu0 }
  0xdd   :  { %1635 = vmatmul.mubr.msk.f32.gmra.mrb[20].mxu0 %vm119_vm1, %v102_v16  ;;  %1657 = vmatprep.mubr.msk.f32.mxu1 %vm119_vm1, %v729_v41 }
  0xde   :  { %1637 = vmatprep.mubr.msk.f32.mxu0 %vm119_vm1, %v103_v18  ;;  %v761_v43 = vpop.trf.xlu1 }
  0xe0   :  { %v730_v42 = vpop.trf.xlu0 }
  0xe1   :  { %1638 = vmatmul.mubr.msk.f32.gmra.mrb[22].mxu0 %vm119_vm1, %v104_v20  ;;  %1658 = vmatmul.mubr.msk.f32.gmra.mrb[2].mxu1 %vm119_vm1, %v730_v42 }
  0xe2   :  { %1640 = vmatprep.mubr.msk.f32.mxu0 %vm119_vm1, %v105_v22  ;;  %v762_v45 = vpop.trf.xlu1 }
  0xe4   :  { %v731_v44 = vpop.trf.xlu0 }
  0xe5   :  { %1641 = vmatmul.mubr.msk.f32.gmra.mrb[24].mxu0 %vm119_vm1, %v106_v24  ;;  %1660 = vmatprep.mubr.msk.f32.mxu1 %vm119_vm1, %v731_v44 }
  0xe6   :  { %1643 = vmatprep.mubr.msk.f32.mxu0 %vm119_vm1, %v107_v26  ;;  %v763_v48 = vpop.trf.xlu1 }
  0xe8   :  { %v732_v46 = vpop.trf.xlu0 }
  0xe9   :  { %1644 = vmatmul.mubr.msk.f32.gmra.mrb[26].mxu0 %vm119_vm1, %v108_v28  ;;  %1661 = vmatmul.mubr.msk.f32.gmra.mrb[4].mxu1 %vm119_vm1, %v732_v46 }
  0xea   :  { %1646 = vmatprep.mubr.msk.f32.mxu0 %vm119_vm1, %v109_v30  ;;  %v764_v50 = vpop.trf.xlu1 }
  0xec   :  { %v733_v47 = vpop.trf.xlu0 }
  0xed   :  { %1647 = vmatmul.mubr.msk.f32.gmra.mrb[28].mxu0 %vm119_vm1, %v110_v32  ;;  %1663 = vmatprep.mubr.msk.f32.mxu1 %vm119_vm1, %v733_v47 }
  0xee   :  { %1649 = vmatprep.mubr.msk.f32.mxu0 %vm119_vm1, %v111_v34  ;;  %v765_v53 = vpop.trf.xlu1 }
  0xf0   :  { %v734_v49 = vpop.trf.xlu0 }
  0xf1   :  { %1650 = vmatmul.mubr.msk.f32.gmra.mrb[30].mxu0 %vm119_vm1, %v112_v36  ;;  %1664 = vmatmul.mubr.msk.f32.gmra.mrb[6].mxu1 %vm119_vm1, %v734_v49 }
  0xf2   :  { %v766_v55 = vpop.trf.xlu1 }
  0xf4   :  { %v735_v51 = vpop.trf.xlu0 }
  0xf5   :  { %1666 = vmatprep.mubr.msk.f32.mxu1 %vm119_vm1, %v735_v51 }
  0xf6   :  { %v767_v58 = vpop.trf.xlu1 }
  0xf8   :  { %v736_v52 = vpop.trf.xlu0 }
  0xf9   :  { %1667 = vmatmul.mubr.msk.f32.gmra.mrb[8].mxu1 %vm119_vm1, %v736_v52 }
  0xfa   :  { %v768_v60 = vpop.trf.xlu1 }
  0xfc   :  { %v737_v54 = vpop.trf.xlu0 }
  0xfd   :  { %1669 = vmatprep.mubr.msk.f32.mxu1 %vm119_vm1, %v737_v54 }
  0xfe   :  { %v769_v63 = vpop.trf.xlu1 }
 0x100   :  { %v738_v56 = vpop.trf.xlu0 }
 0x101   :  { %1670 = vmatmul.mubr.msk.f32.gmra.mrb[10].mxu1 %vm119_vm1, %v738_v56 }
 0x102   :  { %v770_v0 = vpop.trf.xlu1 }
 0x104   :  { %v739_v57 = vpop.trf.xlu0 }
 0x105   :  { %1672 = vmatprep.mubr.msk.f32.mxu1 %vm119_vm1, %v739_v57 }
 0x106   :  { %v771_v1 = vpop.trf.xlu1 }
 0x108   :  { %v740_v59 = vpop.trf.xlu0 }
 0x109   :  { %1673 = vmatmul.mubr.msk.f32.gmra.mrb[12].mxu1 %vm119_vm1, %v740_v59 }
 0x10a   :  { %v772_v2 = vpop.trf.xlu1 }
 0x10c   :  { %v741_v61 = vpop.trf.xlu0 }
 0x10d   :  { %1675 = vmatprep.mubr.msk.f32.mxu1 %vm119_vm1, %v741_v61 }
 0x10e   :  { %v773_v3 = vpop.trf.xlu1 }
 0x110   :  { %v742_v62 = vpop.trf.xlu0 }
 0x111   :  { %1676 = vmatmul.mubr.msk.f32.gmra.mrb[14].mxu1 %vm119_vm1, %v742_v62 }
 0x112   :  { %1678 = vmatprep.mubr.msk.f32.mxu1 %vm119_vm1, %v759_v38  ;;  %v774_v4 = vpop.trf.xlu1 }
 0x115   :  { %1679 = vmatmul.mubr.msk.f32.gmra.mrb[16].mxu1 %vm119_vm1, %v760_v40 }
 0x116   :  { %1681 = vmatprep.mubr.msk.f32.mxu1 %vm119_vm1, %v761_v43 }
 0x119   :  { %1682 = vmatmul.mubr.msk.f32.gmra.mrb[18].mxu1 %vm119_vm1, %v762_v45 }
 0x11a   :  { %1684 = vmatprep.mubr.msk.f32.mxu1 %vm119_vm1, %v763_v48 }
 0x11d   :  { %1685 = vmatmul.mubr.msk.f32.gmra.mrb[20].mxu1 %vm119_vm1, %v764_v50 }
 0x11e   :  { %1687 = vmatprep.mubr.msk.f32.mxu1 %vm119_vm1, %v765_v53 }
 0x121   :  { %1688 = vmatmul.mubr.msk.f32.gmra.mrb[22].mxu1 %vm119_vm1, %v766_v55 }
 0x122   :  { %1690 = vmatprep.mubr.msk.f32.mxu1 %vm119_vm1, %v767_v58 }
 0x125   :  { %1691 = vmatmul.mubr.msk.f32.gmra.mrb[24].mxu1 %vm119_vm1, %v768_v60 }
 0x126   :  { %1693 = vmatprep.mubr.msk.f32.mxu1 %vm119_vm1, %v769_v63 }
 0x129   :  { %1694 = vmatmul.mubr.msk.f32.gmra.mrb[26].mxu1 %vm119_vm1, %v770_v0 }
 0x12a   :  { %1696 = vmatprep.mubr.msk.f32.mxu1 %vm119_vm1, %v771_v1 }
 0x12d   :  { %1697 = vmatmul.mubr.msk.f32.gmra.mrb[28].mxu1 %vm119_vm1, %v772_v2 }
 0x12e   :  { %1699 = vmatprep.mubr.msk.f32.mxu1 %vm119_vm1, %v773_v3 }
 0x131   :  { %1700 = vmatmul.mubr.msk.f32.gmra.mrb[30].mxu1 %vm119_vm1, %v774_v4 }
 0x16c   :  { %v1606_v6 = vpop.f32.mrb[0].mxu0 }
 0x16d   :  { %v292_v7 = vadd.f32 %v1606_v6, %v2136_v5  ;;  %v286_v8 = vpop.f32.mrb[1].mxu0 }
 0x16e   :  { %v287_v9 = vadd.f32 %v2136_v5, %v286_v8 }
 0x16f   :  { %v1439_v10 = vmul.f32 -1.442695, %v292_v7 }
 0x170   :  { %v1438_v11 = vmul.f32 -1.442695, %v287_v9 }
 0x171   :  { %1709 = vpow2.f32 %v1439_v10 }
 0x172   :  { %1711 = vpow2.f32 %v1438_v11 }
 0x174   :  { %v1609_v12 = vpop.f32.mrb[2].mxu0 }
 0x175   :  { %v302_v13 = vadd.f32 %v1609_v12, %v2136_v5  ;;  %v296_v14 = vpop.f32.mrb[3].mxu0 }
 0x176   :  { %v297_v15 = vadd.f32 %v2136_v5, %v296_v14 }
 0x177   :  { %v1441_v16 = vmul.f32 -1.442695, %v302_v13 }
 0x178   :  { %v1440_v17 = vmul.f32 -1.442695, %v297_v15 }
 0x179   :  { %1713 = vpow2.f32 %v1441_v16 }
 0x17a   :  { %1715 = vpow2.f32 %v1440_v17 }
 0x17b   :  { %v1710_v18 = vpop.eup %1709 }
 0x17c   :  { %v1712_v19 = vpop.eup %1711  ;;  %v542_v20 = vadd.f32 1.0, %v1710_v18  ;;  %v1612_v21 = vpop.f32.mrb[4].mxu0 }
 0x17d   :  { %v541_v22 = vadd.f32 1.0, %v1712_v19  ;;  %v2143_v23 = vadd.f32 %v1612_v21, %v2136_v5  ;;  %v306_v24 = vpop.f32.mrb[5].mxu0 }
 0x17e   :  { %1717 = vrcp.f32 %v542_v20  ;;  %v307_v25 = vadd.f32 %v2136_v5, %v306_v24 }
 0x17f   :  { %1719 = vrcp.f32 %v541_v22  ;;  %v1443_v26 = vmul.f32 -1.442695, %v2143_v23 }
 0x180   :  { %v1442_v27 = vmul.f32 -1.442695, %v307_v25 }
 0x181   :  { %1721 = vpow2.f32 %v1443_v26 }
 0x182   :  { %1723 = vpow2.f32 %v1442_v27 }
 0x183   :  { %v1714_v28 = vpop.eup %1713 }
 0x184   :  { %v1716_v29 = vpop.eup %1715  ;;  %v544_v30 = vadd.f32 1.0, %v1714_v28  ;;  %v1615_v31 = vpop.f32.mrb[6].mxu0 }
 0x185   :  { %v543_v32 = vadd.f32 1.0, %v1716_v29  ;;  %v2148_v33 = vadd.f32 %v1615_v31, %v2136_v5  ;;  %v316_v34 = vpop.f32.mrb[7].mxu0 }
 0x186   :  { %1725 = vrcp.f32 %v544_v30  ;;  %v2151_v35 = vadd.f32 %v2136_v5, %v316_v34 }
 0x187   :  { %1727 = vrcp.f32 %v543_v32  ;;  %v1445_v36 = vmul.f32 -1.442695, %v2148_v33 }
 0x188   :  { %v1718_v37 = vpop.eup %1717  ;;  %v1444_v38 = vmul.f32 -1.442695, %v2151_v35 }
 0x189   :  { %v1720_v39 = vpop.eup %1719  ;;  %v638_v40 = vmul.f32 %v1718_v37, %v292_v7  ;;  %1729 = vpow2.f32 %v1445_v36 }
 0x18a   :  { %v637_v41 = vmul.f32 %v1720_v39, %v287_v9  ;;  %1731 = vpow2.f32 %v1444_v38  ;;  %v2017_v38 = vmov 0.0  }
 0x18b   :  { %v1722_v42 = vpop.eup %1721  ;;  %42 = vst [vmem:[#allocation2] sm:$0x3] %v2017_v38 }
 0x18c   :  { %v1724_v43 = vpop.eup %1723  ;;  %v669_v44 = vadd.f32 %v638_v40, %v637_v41  ;;  %v546_v45 = vadd.f32 1.0, %v1722_v42  ;;  %v1618_v46 = vpop.f32.mrb[8].mxu0 }
 0x18d   :  { %v545_v47 = vadd.f32 1.0, %v1724_v43  ;;  %v2156_v48 = vadd.f32 %v1618_v46, %v2136_v5  ;;  %v326_v49 = vpop.f32.mrb[9].mxu0 }
 0x18e   :  { %1733 = vrcp.f32 %v546_v45  ;;  %v2159_v50 = vadd.f32 %v2136_v5, %v326_v49 }
 0x18f   :  { %1735 = vrcp.f32 %v545_v47  ;;  %v1447_v51 = vmul.f32 -1.442695, %v2156_v48 }
 0x190   :  { %v1726_v52 = vpop.eup %1725  ;;  %v1446_v53 = vmul.f32 -1.442695, %v2159_v50 }
 0x191   :  { %v1728_v54 = vpop.eup %1727  ;;  %1737 = vpow2.f32 %v1447_v51  ;;  %v640_v58 = vmul.f32 %v1726_v52, %v302_v13 }
 0x192   :  { %v639_v55 = vmul.f32 %v1728_v54, %v297_v15  ;;  %1739 = vpow2.f32 %v1446_v53 }
 0x193   :  { %v1730_v56 = vpop.eup %1729 }
 0x194   :  { %v1732_v57 = vpop.eup %1731  ;;  %v670_v59 = vadd.f32 %v669_v44, %v639_v55  ;;  %v548_v60 = vadd.f32 1.0, %v1730_v56  ;;  %v1621_v61 = vpop.f32.mrb[10].mxu0 }
 0x195   :  { %v547_v62 = vadd.f32 1.0, %v1732_v57  ;;  %v2164_v63 = vadd.f32 %v1621_v61, %v2136_v5  ;;  %v336_v0 = vpop.f32.mrb[11].mxu0 }
 0x196   :  { %v671_v1 = vadd.f32 %v670_v59, %v640_v58  ;;  %1741 = vrcp.f32 %v548_v60  ;;  %v2167_v2 = vadd.f32 %v2136_v5, %v336_v0 }
 0x197   :  { %1743 = vrcp.f32 %v547_v62  ;;  %v1449_v3 = vmul.f32 -1.442695, %v2164_v63 }
 0x198   :  { %v1734_v4 = vpop.eup %1733  ;;  %v1448_v6 = vmul.f32 -1.442695, %v2167_v2 }
 0x199   :  { %v1736_v7 = vpop.eup %1735  ;;  %1745 = vpow2.f32 %v1449_v3  ;;  %v642_v11 = vmul.f32 %v1734_v4, %v2143_v23 }
 0x19a   :  { %v641_v8 = vmul.f32 %v1736_v7, %v307_v25  ;;  %1747 = vpow2.f32 %v1448_v6 }
 0x19b   :  { %v1738_v9 = vpop.eup %1737 }
 0x19c   :  { %v1740_v10 = vpop.eup %1739  ;;  %v672_v12 = vadd.f32 %v671_v1, %v641_v8  ;;  %v550_v13 = vadd.f32 1.0, %v1738_v9  ;;  %v1624_v14 = vpop.f32.mrb[12].mxu0 }
 0x19d   :  { %v549_v15 = vadd.f32 1.0, %v1740_v10  ;;  %v2173_v16 = vadd.f32 %v1624_v14, %v2136_v5  ;;  %v346_v17 = vpop.f32.mrb[13].mxu0 }
 0x19e   :  { %v673_v18 = vadd.f32 %v672_v12, %v642_v11  ;;  %1749 = vrcp.f32 %v550_v13  ;;  %v2176_v19 = vadd.f32 %v2136_v5, %v346_v17 }
 0x19f   :  { %1751 = vrcp.f32 %v549_v15  ;;  %v1451_v20 = vmul.f32 -1.442695, %v2173_v16 }
 0x1a0   :  { %v1742_v21 = vpop.eup %1741  ;;  %v1450_v22 = vmul.f32 -1.442695, %v2176_v19 }
 0x1a1   :  { %v1744_v23 = vpop.eup %1743  ;;  %1753 = vpow2.f32 %v1451_v20  ;;  %v644_v27 = vmul.f32 %v1742_v21, %v2148_v33 }
 0x1a2   :  { %v643_v24 = vmul.f32 %v1744_v23, %v2151_v35  ;;  %1755 = vpow2.f32 %v1450_v22 }
 0x1a3   :  { %v1746_v25 = vpop.eup %1745 }
 0x1a4   :  { %v1748_v26 = vpop.eup %1747  ;;  %v674_v28 = vadd.f32 %v673_v18, %v643_v24  ;;  %v552_v29 = vadd.f32 1.0, %v1746_v25  ;;  %v1627_v30 = vpop.f32.mrb[14].mxu0 }
 0x1a5   :  { %v551_v31 = vadd.f32 1.0, %v1748_v26  ;;  %v2183_v32 = vadd.f32 %v1627_v30, %v2136_v5  ;;  %v356_v34 = vpop.f32.mrb[15].mxu0 }
 0x1a6   :  { %v675_v36 = vadd.f32 %v674_v28, %v644_v27  ;;  %1757 = vrcp.f32 %v552_v29  ;;  %v2186_v37 = vadd.f32 %v2136_v5, %v356_v34 }
 0x1a7   :  { %1759 = vrcp.f32 %v551_v31  ;;  %v1453_v35 = vmul.f32 -1.442695, %v2183_v32 }
 0x1a8   :  { %v1750_v39 = vpop.eup %1749  ;;  %v1452_v33 = vmul.f32 -1.442695, %v2186_v37  ;;  %v1630_v40 = vpop.f32.mrb[16].mxu0 }
 0x1a9   :  { %v1752_v41 = vpop.eup %1751  ;;  %1761 = vpow2.f32 %v1453_v35  ;;  %v2191_v42 = vadd.f32 %v1630_v40, %v2136_v5  ;;  %v366_v43 = vpop.f32.mrb[17].mxu0  ;;  %v646_v51 = vmul.f32 %v1750_v39, %v2156_v48 }
 0x1aa   :  { %v645_v44 = vmul.f32 %v1752_v41, %v2159_v50  ;;  %1763 = vpow2.f32 %v1452_v33  ;;  %v2195_v45 = vadd.f32 %v2136_v5, %v366_v43 }
 0x1ab   :  { %v1754_v46 = vpop.eup %1753  ;;  %v1455_v47 = vmul.f32 -1.442695, %v2191_v42 }
 0x1ac   :  { %v1756_v49 = vpop.eup %1755  ;;  %v676_v52 = vadd.f32 %v675_v36, %v645_v44  ;;  %v554_v53 = vadd.f32 1.0, %v1754_v46  ;;  %v1454_v54 = vmul.f32 -1.442695, %v2195_v45  ;;  %v1633_v55 = vpop.f32.mrb[18].mxu0 }
 0x1ad   :  { %v1656_v56 = vpop.f32.mrb[0].mxu1  ;;  %v553_v57 = vadd.f32 1.0, %v1756_v49  ;;  %1765 = vpow2.f32 %v1455_v47  ;;  %v2201_v50 = vadd.f32 %v1633_v55, %v2136_v5  ;;  %v376_v59 = vpop.f32.mrb[19].mxu0 }
 0x1ae   :  { %v2204_v58 = vadd.f32 %v1656_v56, %v2136_v5  ;;  %v937_v60 = vpop.f32.mrb[1].mxu1  ;;  %v677_v61 = vadd.f32 %v676_v52, %v646_v51  ;;  %1767 = vrcp.f32 %v554_v53  ;;  %v2207_v48 = vadd.f32 %v2136_v5, %v376_v59 }
 0x1af   :  { %v2210_v62 = vadd.f32 %v2136_v5, %v937_v60  ;;  %1769 = vrcp.f32 %v553_v57  ;;  %v1457_v0 = vmul.f32 -1.442695, %v2201_v50 }
 0x1b0   :  { %v1504_v1 = vmul.f32 -1.442695, %v2204_v58  ;;  %v1758_v3 = vpop.eup %1757  ;;  %1771 = vpow2.f32 %v1454_v54  ;;  %v1456_v4 = vmul.f32 -1.442695, %v2207_v48  ;;  %v1636_v7 = vpop.f32.mrb[20].mxu0 }
 0x1b1   :  { %v1503_v6 = vmul.f32 -1.442695, %v2210_v62  ;;  %v1760_v8 = vpop.eup %1759  ;;  %1773 = vpow2.f32 %v1457_v0  ;;  %v2217_v9 = vadd.f32 %v1636_v7, %v2136_v5  ;;  %v386_v10 = vpop.f32.mrb[21].mxu0  ;;  %v648_v14 = vmul.f32 %v1758_v3, %v2164_v63 }
 0x1b2   :  { %v647_v11 = vmul.f32 %v1760_v8, %v2167_v2  ;;  %1775 = vpow2.f32 %v1504_v1  ;;  %v2221_v12 = vadd.f32 %v2136_v5, %v386_v10 }
 0x1b3   :  { %v1762_v13 = vpop.eup %1761  ;;  %1777 = vpow2.f32 %v1456_v4  ;;  %v1459_v15 = vmul.f32 -1.442695, %v2217_v9 }
 0x1b4   :  { %v1764_v17 = vpop.eup %1763  ;;  %v678_v18 = vadd.f32 %v677_v61, %v647_v11  ;;  %v556_v20 = vadd.f32 1.0, %v1762_v13  ;;  %1779 = vpow2.f32 %v1503_v6  ;;  %v1458_v21 = vmul.f32 -1.442695, %v2221_v12  ;;  %v1639_v22 = vpop.f32.mrb[22].mxu0 }
 0x1b5   :  { %v1659_v23 = vpop.f32.mrb[2].mxu1  ;;  %v555_v24 = vadd.f32 1.0, %v1764_v17  ;;  %1781 = vpow2.f32 %v1459_v15  ;;  %v2227_v2 = vadd.f32 %v1639_v22, %v2136_v5  ;;  %v396_v63 = vpop.f32.mrb[23].mxu0 }
 0x1b6   :  { %v2230_v25 = vadd.f32 %v1659_v23, %v2136_v5  ;;  %v947_v26 = vpop.f32.mrb[3].mxu1  ;;  %v679_v27 = vadd.f32 %v678_v18, %v648_v14  ;;  %1783 = vrcp.f32 %v556_v20  ;;  %v2233_v28 = vadd.f32 %v2136_v5, %v396_v63 }
 0x1b7   :  { %v1766_v29 = vpop.eup %1765  ;;  %1785 = vrcp.f32 %v555_v24  ;;  %v1461_v30 = vmul.f32 -1.442695, %v2227_v2  ;;  %v2241_v47 = vadd.f32 %v2136_v5, %v947_v26 }
 0x1b8   :  { %v1506_v31 = vmul.f32 -1.442695, %v2230_v25  ;;  %v1768_v34 = vpop.eup %1767  ;;  %v558_v36 = vadd.f32 1.0, %v1766_v29  ;;  %1787 = vpow2.f32 %v1458_v21  ;;  %v1460_v38 = vmul.f32 -1.442695, %v2233_v28  ;;  %v1642_v35 = vpop.f32.mrb[24].mxu0 }
 0x1b9   :  { %v1770_v39 = vpop.eup %1769  ;;  %1789 = vpow2.f32 %v1461_v30  ;;  %v406_v33 = vpop.f32.mrb[25].mxu0  ;;  %v650_v44 = vmul.f32 %v1768_v34, %v2173_v16  ;;  %v2244_v53 = vadd.f32 %v1642_v35, %v2136_v5  ;;  %v1505_v4 = vmul.f32 -1.442695, %v2241_v47 }
 0x1ba   :  { %v1772_v40 = vpop.eup %1771  ;;  %v649_v41 = vmul.f32 %v1770_v39, %v2176_v19  ;;  %1791 = vrcp.f32 %v558_v36  ;;  %v2247_v0 = vadd.f32 %v2136_v5, %v406_v33 }
 0x1bb   :  { %v1774_v43 = vpop.eup %1773  ;;  %v557_v46 = vadd.f32 1.0, %v1772_v40  ;;  %1793 = vpow2.f32 %v1506_v31  ;;  %v1463_v8 = vmul.f32 -1.442695, %v2244_v53 }
 0x1bc   :  { %v1776_v49 = vpop.eup %1775  ;;  %v680_v51 = vadd.f32 %v679_v27, %v649_v41  ;;  %v560_v52 = vadd.f32 1.0, %v1774_v43  ;;  %1795 = vpow2.f32 %v1460_v38  ;;  %v1645_v54 = vpop.f32.mrb[26].mxu0  ;;  %v1462_v17 = vmul.f32 -1.442695, %v2247_v0 }
 0x1bd   :  { %v1662_v55 = vpop.f32.mrb[4].mxu1  ;;  %v1778_v56 = vpop.eup %1777  ;;  %1797 = vrcp.f32 %v557_v46  ;;  %v1193_v19 = vadd.f32 1.0, %v1776_v49  ;;  %v2254_v18 = vadd.f32 %v1645_v54, %v2136_v5 }
 0x1be   :  { %v416_v57 = vpop.f32.mrb[27].mxu0  ;;  %v957_v59 = vpop.f32.mrb[5].mxu1  ;;  %v681_v60 = vadd.f32 %v680_v51, %v650_v44  ;;  %1799 = vrcp.f32 %v560_v52  ;;  %v559_v61 = vadd.f32 1.0, %v1778_v56  ;;  %v2257_v22 = vadd.f32 %v1662_v55, %v2136_v5 }
 0x1bf   :  { %v1780_v16 = vpop.eup %1779  ;;  %1801 = vrcp.f32 %v1193_v19  ;;  %v2260_v23 = vadd.f32 %v2136_v5, %v416_v57  ;;  %v2264_v31 = vadd.f32 %v2136_v5, %v957_v59 }
 0x1c0   :  { %v1782_v1 = vpop.eup %1781  ;;  %v1192_v3 = vadd.f32 1.0, %v1780_v16  ;;  %1803 = vrcp.f32 %v559_v61  ;;  %v1648_v10 = vpop.f32.mrb[28].mxu0  ;;  %v1508_v43 = vmul.f32 -1.442695, %v2257_v22 }
 0x1c1   :  { %v1784_v6 = vpop.eup %1783  ;;  %v562_v7 = vadd.f32 1.0, %v1782_v1  ;;  %v426_v13 = vpop.f32.mrb[29].mxu0  ;;  %v2267_v34 = vadd.f32 %v1648_v10, %v2136_v5  ;;  %v1464_v51 = vmul.f32 -1.442695, %v2260_v23  ;;  %v1507_v54 = vmul.f32 -1.442695, %v2264_v31 }
 0x1c2   :  { %v1786_v11 = vpop.eup %1785  ;;  %1805 = vrcp.f32 %v1192_v3  ;;  %v652_v63 = vmul.f32 %v1784_v6, %v2183_v32  ;;  %v1465_v32 = vmul.f32 -1.442695, %v2254_v18  ;;  %v2272_v44 = vadd.f32 %v2136_v5, %v426_v13 }
 0x1c3   :  { %v1788_v14 = vpop.eup %1787  ;;  %v651_v15 = vmul.f32 %v1786_v11, %v2186_v37  ;;  %1807 = vrcp.f32 %v562_v7  ;;  %v1467_v55 = vmul.f32 -1.442695, %v2267_v34 }
 0x1c4   :  { %v1790_v20 = vpop.eup %1789  ;;  %v561_v21 = vadd.f32 1.0, %v1788_v14  ;;  %1809 = vpow2.f32 %v1505_v4  ;;  %v1651_v27 = vpop.f32.mrb[30].mxu0  ;;  %v1466_v61 = vmul.f32 -1.442695, %v2272_v44 }
 0x1c5   :  { %v1792_v24 = vpop.eup %1791  ;;  %v682_v26 = vadd.f32 %v681_v60, %v651_v15  ;;  %v564_v37 = vadd.f32 1.0, %v1790_v20  ;;  %1811 = vpow2.f32 %v1463_v8  ;;  %v1665_v29 = vpop.f32.mrb[6].mxu1  ;;  %v2279_v56 = vadd.f32 %v1651_v27, %v2136_v5 }
 0x1c6   :  { %v1794_v30 = vpop.eup %1793  ;;  %1813 = vrcp.f32 %v561_v21  ;;  %v436_v36 = vpop.f32.mrb[31].mxu0  ;;  %v654_v57 = vmul.f32 %v1792_v24, %v2191_v42  ;;  %v2286_v1 = vadd.f32 %v1665_v29, %v2136_v5 }
 0x1c7   :  { %v967_v38 = vpop.f32.mrb[7].mxu1  ;;  %v1796_v35 = vpop.eup %1795  ;;  %v683_v39 = vadd.f32 %v682_v26, %v652_v63  ;;  %1815 = vrcp.f32 %v564_v37  ;;  %v1195_v33 = vadd.f32 1.0, %v1794_v30  ;;  %v2290_v42 = vadd.f32 %v2136_v5, %v436_v36 }
 0x1c8   :  { %v1798_v40 = vpop.eup %1797  ;;  %v563_v41 = vadd.f32 1.0, %v1796_v35  ;;  %1817 = vpow2.f32 %v1462_v17  ;;  %v2295_v10 = vadd.f32 %v2136_v5, %v967_v38  ;;  %v1510_v21 = vmul.f32 -1.442695, %v2286_v1 }
 0x1c9   :  { %v1800_v46 = vpop.eup %1799  ;;  %v653_v49 = vmul.f32 %v1798_v40, %v2195_v45  ;;  %1819 = vrcp.f32 %v1195_v33  ;;  %v1468_v37 = vmul.f32 -1.442695, %v2290_v42 }
 0x1ca   :  { %v1802_v52 = vpop.eup %1801  ;;  %1821 = vrcp.f32 %v563_v41  ;;  %v656_v8 = vmul.f32 %v1800_v46, %v2201_v50  ;;  %v1509_v27 = vmul.f32 -1.442695, %v2295_v10 }
 0x1cb   :  { %v1804_v19 = vpop.eup %1803  ;;  %v684_v59 = vadd.f32 %v683_v39, %v653_v49  ;;  %v1289_v16 = vmul.f32 %v1802_v52, %v2204_v58  ;;  %1823 = vpow2.f32 %v1465_v32 }
 0x1cc   :  { %v1806_v45 = vpop.eup %1805  ;;  %v655_v60 = vmul.f32 %v1804_v19, %v2207_v48  ;;  %1825 = vpow2.f32 %v1508_v43  ;;  %v1668_v7 = vpop.f32.mrb[8].mxu1  ;;  %v1469_v48 = vmul.f32 -1.442695, %v2279_v56 }
 0x1cd   :  { %v1808_v3 = vpop.eup %1807  ;;  %v685_v4 = vadd.f32 %v684_v59, %v654_v57  ;;  %v1288_v6 = vmul.f32 %v1806_v45, %v2210_v62  ;;  %1827 = vpow2.f32 %v1464_v51  ;;  %v977_v11 = vpop.f32.mrb[9].mxu1  ;;  %v2306_v43 = vadd.f32 %v1668_v7, %v2136_v5 }
 0x1ce   :  { %v1810_v58 = vpop.eup %1809  ;;  %1829 = vpow2.f32 %v1507_v54  ;;  %v658_v30 = vmul.f32 %v1808_v3, %v2217_v9  ;;  %v2309_v46 = vadd.f32 %v2136_v5, %v977_v11 }
 0x1cf   :  { %v1812_v13 = vpop.eup %1811  ;;  %v686_v14 = vadd.f32 %v685_v4, %v655_v60  ;;  %v2297_v15 = vadd.f32 %v1289_v16, %v1288_v6  ;;  %v1194_v62 = vadd.f32 1.0, %v1810_v58  ;;  %1831 = vpow2.f32 %v1467_v55 }
 0x1d0   :  { %v1814_v17 = vpop.eup %1813  ;;  %v566_v20 = vadd.f32 1.0, %v1812_v13  ;;  %1833 = vpow2.f32 %v1466_v61  ;;  %v1512_v61 = vmul.f32 -1.442695, %v2306_v43  ;;  %v1511_v4 = vmul.f32 -1.442695, %v2309_v46 }
 0x1d1   :  { %v1816_v24 = vpop.eup %1815  ;;  %v657_v50 = vmul.f32 %v1814_v17, %v2221_v12  ;;  %v687_v63 = vadd.f32 %v686_v14, %v656_v8  ;;  %1835 = vrcp.f32 %v1194_v62 }
 0x1d2   :  { %v1818_v26 = vpop.eup %1817  ;;  %1837 = vrcp.f32 %v566_v20  ;;  %v660_v51 = vmul.f32 %v1816_v24, %v2227_v2 }
 0x1d3   :  { %v1820_v29 = vpop.eup %1819  ;;  %v688_v36 = vadd.f32 %v687_v63, %v657_v50  ;;  %v565_v38 = vadd.f32 1.0, %v1818_v26  ;;  %1839 = vpow2.f32 %v1469_v48 }
 0x1d4   :  { %v1822_v35 = vpop.eup %1821  ;;  %1841 = vpow2.f32 %v1510_v21  ;;  %v1671_v32 = vpop.f32.mrb[10].mxu1  ;;  %v1291_v8 = vmul.f32 %v1820_v29, %v2230_v25 }
 0x1d5   :  { %v1824_v39 = vpop.eup %1823  ;;  %v659_v33 = vmul.f32 %v1822_v35, %v2233_v28  ;;  %v689_v12 = vadd.f32 %v688_v36, %v658_v30  ;;  %1843 = vrcp.f32 %v565_v38  ;;  %v987_v9 = vpop.f32.mrb[11].mxu1  ;;  %v2313_v16 = vadd.f32 %v1671_v32, %v2136_v5 }
 0x1d6   :  { %v1826_v40 = vpop.eup %1825  ;;  %v568_v41 = vadd.f32 1.0, %v1824_v39  ;;  %1845 = vpow2.f32 %v1468_v37  ;;  %v2321_v11 = vadd.f32 %v2136_v5, %v987_v9 }
 0x1d7   :  { %v1828_v49 = vpop.eup %1827  ;;  %v690_v52 = vadd.f32 %v689_v12, %v659_v33  ;;  %v1197_v54 = vadd.f32 1.0, %v1826_v40  ;;  %1847 = vpow2.f32 %v1509_v27  ;;  %v1514_v48 = vmul.f32 -1.442695, %v2313_v16 }
 0x1d8   :  { %v1830_v28 = vpop.eup %1829  ;;  %1849 = vrcp.f32 %v568_v41  ;;  %v567_v55 = vadd.f32 1.0, %v1828_v49  ;;  %v1513_v29 = vmul.f32 -1.442695, %v2321_v11 }
 0x1d9   :  { %v1832_v19 = vpop.eup %1831  ;;  %v691_v57 = vadd.f32 %v690_v52, %v660_v51  ;;  %1851 = vrcp.f32 %v1197_v54  ;;  %v1196_v59 = vadd.f32 1.0, %v1830_v28 }
 0x1da   :  { %v1834_v45 = vpop.eup %1833  ;;  %1853 = vrcp.f32 %v567_v55  ;;  %v570_v60 = vadd.f32 1.0, %v1832_v19 }
 0x1db   :  { %v1836_v3 = vpop.eup %1835  ;;  %1855 = vrcp.f32 %v1196_v59  ;;  %v569_v2 = vadd.f32 1.0, %v1834_v45 }
 0x1dc   :  { %v1838_v6 = vpop.eup %1837  ;;  %v1290_v7 = vmul.f32 %v1836_v3, %v2241_v47  ;;  %1857 = vrcp.f32 %v570_v60  ;;  %v1674_v13 = vpop.f32.mrb[12].mxu1 }
 0x1dd   :  { %v1840_v58 = vpop.eup %1839  ;;  %1859 = vrcp.f32 %v569_v2  ;;  %v2325_v20 = vadd.f32 %v1674_v13, %v2136_v5  ;;  %v997_v47 = vpop.f32.mrb[13].mxu1 }
 0x1de   :  { %v1842_v14 = vpop.eup %1841  ;;  %v1321_v62 = vadd.f32 %v2297_v15, %v1290_v7  ;;  %v572_v17 = vadd.f32 1.0, %v1840_v58  ;;  %1861 = vpow2.f32 %v1512_v61  ;;  %v2328_v25 = vadd.f32 %v2136_v5, %v997_v47 }
 0x1df   :  { %v1844_v21 = vpop.eup %1843  ;;  %v1199_v24 = vadd.f32 1.0, %v1842_v14  ;;  %1863 = vpow2.f32 %v1511_v4  ;;  %v662_v15 = vmul.f32 %v1838_v6, %v2244_v53  ;;  %v1516_v35 = vmul.f32 -1.442695, %v2325_v20 }
 0x1e0   :  { %v1846_v50 = vpop.eup %1845  ;;  %v661_v63 = vmul.f32 %v1844_v21, %v2247_v0  ;;  %v1322_v26 = vadd.f32 %v1321_v62, %v1291_v8  ;;  %1865 = vrcp.f32 %v572_v17  ;;  %v1515_v33 = vmul.f32 -1.442695, %v2328_v25 }
 0x1e1   :  { %v1848_v37 = vpop.eup %1847  ;;  %1867 = vrcp.f32 %v1199_v24  ;;  %v571_v27 = vadd.f32 1.0, %v1846_v50 }
 0x1e2   :  { %v1850_v30 = vpop.eup %1849  ;;  %v692_v36 = vadd.f32 %v691_v57, %v661_v63  ;;  %v1198_v38 = vadd.f32 1.0, %v1848_v37  ;;  %1869 = vpow2.f32 %v1514_v48 }
 0x1e3   :  { %v1852_v39 = vpop.eup %1851  ;;  %1871 = vrcp.f32 %v571_v27  ;;  %v664_v54 = vmul.f32 %v1850_v30, %v2254_v18 }
 0x1e4   :  { %v1854_v0 = vpop.eup %1853  ;;  %v693_v12 = vadd.f32 %v692_v36, %v662_v15  ;;  %1873 = vrcp.f32 %v1198_v38  ;;  %v1677_v40 = vpop.f32.mrb[14].mxu1 }
 0x1e5   :  { %v1856_v32 = vpop.eup %1855  ;;  %v663_v53 = vmul.f32 %v1854_v0, %v2260_v23  ;;  %1875 = vpow2.f32 %v1513_v29  ;;  %v2338_v49 = vadd.f32 %v1677_v40, %v2136_v5  ;;  %v1007_v51 = vpop.f32.mrb[15].mxu1  ;;  %v1293_v23 = vmul.f32 %v1852_v39, %v2257_v22 }
 0x1e6   :  { %v1858_v41 = vpop.eup %1857  ;;  %v1292_v9 = vmul.f32 %v1856_v32, %v2264_v31  ;;  %1877 = vpow2.f32 %v1516_v35  ;;  %v2342_v55 = vadd.f32 %v2136_v5, %v1007_v51 }
 0x1e7   :  { %v1860_v52 = vpop.eup %1859  ;;  %v694_v28 = vadd.f32 %v693_v12, %v663_v53  ;;  %1879 = vpow2.f32 %v1515_v33  ;;  %v1518_v31 = vmul.f32 -1.442695, %v2338_v49  ;;  %v666_v8 = vmul.f32 %v1858_v41, %v2267_v34 }
 0x1e8   :  { %v1862_v19 = vpop.eup %1861  ;;  %v1323_v57 = vadd.f32 %v1322_v26, %v1292_v9  ;;  %v665_v59 = vmul.f32 %v1860_v52, %v2272_v44  ;;  %v1517_v3 = vmul.f32 -1.442695, %v2342_v55  ;;  %v1680_v2 = vpop.f32.mrb[16].mxu1 }
 0x1e9   :  { %v1864_v45 = vpop.eup %1863  ;;  %v695_v60 = vadd.f32 %v694_v28, %v664_v54  ;;  %v1201_v61 = vadd.f32 1.0, %v1862_v19  ;;  %1881 = vpow2.f32 %v1518_v31  ;;  %v2349_v7 = vadd.f32 %v1680_v2, %v2136_v5  ;;  %v1017_v58 = vpop.f32.mrb[17].mxu1 }
 0x1ea   :  { %v1866_v18 = vpop.eup %1865  ;;  %v1324_v4 = vadd.f32 %v1323_v57, %v1293_v23  ;;  %v1200_v6 = vadd.f32 1.0, %v1864_v45  ;;  %v2353_v48 = vadd.f32 %v2136_v5, %v1017_v58 }
 0x1eb   :  { %v1868_v22 = vpop.eup %1867  ;;  %v696_v44 = vadd.f32 %v695_v60, %v665_v59  ;;  %1883 = vrcp.f32 %v1201_v61  ;;  %v1520_v14 = vmul.f32 -1.442695, %v2349_v7  ;;  %v668_v15 = vmul.f32 %v1866_v18, %v2279_v56 }
 0x1ec   :  { %v1870_v13 = vpop.eup %1869  ;;  %1885 = vrcp.f32 %v1200_v6  ;;  %v1519_v21 = vmul.f32 -1.442695, %v2353_v48  ;;  %v1683_v24 = vpop.f32.mrb[18].mxu1  ;;  %v1295_v36 = vmul.f32 %v1868_v22, %v2286_v1 }
 0x1ed   :  { %v1872_v62 = vpop.eup %1871  ;;  %v697_v17 = vadd.f32 %v696_v44, %v666_v8  ;;  %v1203_v47 = vadd.f32 1.0, %v1870_v13  ;;  %1887 = vpow2.f32 %v1517_v3  ;;  %v2359_v34 = vadd.f32 %v1683_v24, %v2136_v5  ;;  %v1027_v26 = vpop.f32.mrb[19].mxu1 }
 0x1ee   :  { %v1874_v50 = vpop.eup %1873  ;;  %v667_v63 = vmul.f32 %v1872_v62, %v2290_v42  ;;  %1889 = vpow2.f32 %v1520_v14  ;;  %v2364_v29 = vadd.f32 %v2136_v5, %v1027_v26 }
 0x1ef   :  { %v1876_v37 = vpop.eup %1875  ;;  %v1294_v27 = vmul.f32 %v1874_v50, %v2295_v10  ;;  %1891 = vrcp.f32 %v1203_v47  ;;  %v1522_v0 = vmul.f32 -1.442695, %v2359_v34 }
 0x1f0   :  { %v1878_v30 = vpop.eup %1877  ;;  %v698_v38 = vadd.f32 %v697_v17, %v667_v63  ;;  %v1202_v35 = vadd.f32 1.0, %v1876_v37  ;;  %1893 = vpow2.f32 %v1519_v21  ;;  %v1521_v12 = vmul.f32 -1.442695, %v2364_v29  ;;  %v1686_v56 = vpop.f32.mrb[20].mxu1 }
 0x1f1   :  { %v1880_v42 = vpop.eup %1879  ;;  %v1325_v39 = vadd.f32 %v1324_v4, %v1294_v27  ;;  %v1205_v33 = vadd.f32 1.0, %v1878_v30  ;;  %v2372_v53 = vadd.f32 %v1686_v56, %v2136_v5  ;;  %v1037_v40 = vpop.f32.mrb[21].mxu1 }
 0x1f2   :  { %v2369_v32 = vadd.f32 %v698_v38, %v668_v15  ;;  %1895 = vrcp.f32 %v1202_v35  ;;  %v1204_v10 = vadd.f32 1.0, %v1880_v42  ;;  %v2375_v41 = vadd.f32 %v2136_v5, %v1037_v40 }
 0x1f3   :  { %v1326_v1 = vadd.f32 %v1325_v39, %v1295_v36  ;;  %1897 = vrcp.f32 %v1205_v33  ;;  %v1882_v9 = vpop.eup %1881  ;;  %v1524_v51 = vmul.f32 -1.442695, %v2372_v53 }
 0x1f4   :  { %1899 = vrcp.f32 %v1204_v10  ;;  %v1207_v54 = vadd.f32 1.0, %v1882_v9  ;;  %v1523_v28 = vmul.f32 -1.442695, %v2375_v41  ;;  %v1689_v19 = vpop.f32.mrb[22].mxu1 }
 0x1f5   :  { %v1884_v52 = vpop.eup %1883  ;;  %1901 = vpow2.f32 %v1522_v0  ;;  %v2380_v57 = vadd.f32 %v1689_v19, %v2136_v5  ;;  %v1047_v59 = vpop.f32.mrb[23].mxu1 }
 0x1f6   :  { %v1886_v23 = vpop.eup %1885  ;;  %1903 = vpow2.f32 %v1521_v12  ;;  %v2384_v60 = vadd.f32 %v2136_v5, %v1047_v59  ;;  %v1297_v4 = vmul.f32 %v1884_v52, %v2306_v43 }
 0x1f7   :  { %v1888_v31 = vpop.eup %1887  ;;  %v1296_v45 = vmul.f32 %v1886_v23, %v2309_v46  ;;  %1905 = vrcp.f32 %v1207_v54  ;;  %v1526_v2 = vmul.f32 -1.442695, %v2380_v57 }
 0x1f8   :  { %v1890_v61 = vpop.eup %1889  ;;  %v1206_v3 = vadd.f32 1.0, %v1888_v31  ;;  %1907 = vpow2.f32 %v1524_v51  ;;  %v1692_v22 = vpop.f32.mrb[24].mxu1  ;;  %v1525_v46 = vmul.f32 -1.442695, %v2384_v60 }
 0x1f9   :  { %v1892_v18 = vpop.eup %1891  ;;  %v1327_v6 = vadd.f32 %v1326_v1, %v1296_v45  ;;  %v1209_v58 = vadd.f32 1.0, %v1890_v61  ;;  %1909 = vpow2.f32 %v1523_v28  ;;  %v2390_v44 = vadd.f32 %v1692_v22, %v2136_v5  ;;  %v1057_v13 = vpop.f32.mrb[25].mxu1 }
 0x1fa   :  { %v1894_v8 = vpop.eup %1893  ;;  %1911 = vrcp.f32 %v1206_v3  ;;  %v2393_v17 = vadd.f32 %v2136_v5, %v1057_v13  ;;  %v1299_v37 = vmul.f32 %v1892_v18, %v2313_v16  ;;  %v1965_v5 = vld [vmem:[%s2465_s2] ss:$0 sm:$0xff] }
 0x1fb   :  { %v1328_v14 = vadd.f32 %v1327_v6, %v1297_v4  ;;  %1913 = vrcp.f32 %v1209_v58  ;;  %v1208_v62 = vadd.f32 1.0, %v1894_v8  ;;  %v1528_v43 = vmul.f32 -1.442695, %v2390_v44 }
 0x1fc   :  { %v1896_v47 = vpop.eup %1895  ;;  %1915 = vpow2.f32 %v1526_v2  ;;  %v1527_v50 = vmul.f32 -1.442695, %v2393_v17  ;;  %v1695_v63 = vpop.f32.mrb[26].mxu1 }
 0x1fd   :  { %v1898_v21 = vpop.eup %1897  ;;  %v1298_v24 = vmul.f32 %v1896_v47, %v2321_v11  ;;  %1917 = vrcp.f32 %v1208_v62  ;;  %v2402_v15 = vadd.f32 %v1965_v5, %v1695_v63  ;;  %v1067_v27 = vpop.f32.mrb[27].mxu1 }
 0x1fe   :  { %v1900_v26 = vpop.eup %1899  ;;  %1919 = vpow2.f32 %v1525_v46  ;;  %v2405_v11 = vadd.f32 %v1965_v5, %v1067_v27  ;;  %v1301_v10 = vmul.f32 %v1898_v21, %v2325_v20 }
 0x1ff   :  { %v1902_v30 = vpop.eup %1901  ;;  %v1329_v36 = vadd.f32 %v1328_v14, %v1298_v24  ;;  %v1300_v38 = vmul.f32 %v1900_v26, %v2328_v25  ;;  %1921 = vpow2.f32 %v1528_v43  ;;  %v1530_v16 = vmul.f32 -1.442695, %v2402_v15 }
 0x200   :  { %v1904_v35 = vpop.eup %1903  ;;  %v1211_v42 = vadd.f32 1.0, %v1902_v30  ;;  %1923 = vpow2.f32 %v1527_v50  ;;  %v1698_v12 = vpop.f32.mrb[28].mxu1  ;;  %v1529_v40 = vmul.f32 -1.442695, %v2405_v11 }
 0x201   :  { %v1906_v39 = vpop.eup %1905  ;;  %v1330_v33 = vadd.f32 %v1329_v36, %v1299_v37  ;;  %v1210_v0 = vadd.f32 1.0, %v1904_v35  ;;  %v2410_v1 = vadd.f32 %v1965_v5, %v1698_v12  ;;  %v1077_v25 = vpop.f32.mrb[29].mxu1 }
 0x202   :  { %v1908_v56 = vpop.eup %1907  ;;  %1925 = vrcp.f32 %v1211_v42  ;;  %v2412_v54 = vadd.f32 %v1965_v5, %v1077_v25  ;;  %v1303_v3 = vmul.f32 %v1906_v39, %v2338_v49 }
 0x203   :  { %v1910_v9 = vpop.eup %1909  ;;  %v1331_v51 = vadd.f32 %v1330_v33, %v1300_v38  ;;  %1927 = vrcp.f32 %v1210_v0  ;;  %v1213_v52 = vadd.f32 1.0, %v1908_v56  ;;  %v1532_v23 = vmul.f32 -1.442695, %v2410_v1 }
 0x204   :  { %v1912_v28 = vpop.eup %1911  ;;  %v1212_v19 = vadd.f32 1.0, %v1910_v9  ;;  %1929 = vpow2.f32 %v1530_v16  ;;  %v1701_v45 = vpop.f32.mrb[30].mxu1  ;;  %v1531_v2 = vmul.f32 -1.442695, %v2412_v54 }
 0x205   :  { %v1914_v59 = vpop.eup %1913  ;;  %v1302_v20 = vmul.f32 %v1912_v28, %v2342_v55  ;;  %v1332_v31 = vadd.f32 %v1331_v51, %v1301_v10  ;;  %1931 = vrcp.f32 %v1213_v52  ;;  %v2418_v18 = vadd.f32 %v1965_v5, %v1701_v45  ;;  %v1087_v4 = vpop.f32.mrb[31].mxu1 }
 0x206   :  { %v1916_v61 = vpop.eup %1915  ;;  %1933 = vrcp.f32 %v1212_v19  ;;  %v2420_v8 = vadd.f32 %v1965_v5, %v1087_v4  ;;  %v1305_v47 = vmul.f32 %v1914_v59, %v2349_v7 }
 0x207   :  { %v1918_v6 = vpop.eup %1917  ;;  %v1333_v58 = vadd.f32 %v1332_v31, %v1302_v20  ;;  %v1215_v22 = vadd.f32 1.0, %v1916_v61  ;;  %1935 = vpow2.f32 %v1529_v40  ;;  %v1534_v21 = vmul.f32 -1.442695, %v2418_v18 }
 0x208   :  { %v1920_v46 = vpop.eup %1919  ;;  %v1304_v55 = vmul.f32 %v1918_v6, %v2353_v48  ;;  %1937 = vpow2.f32 %v1532_v23  ;;  %v1533_v63 = vmul.f32 -1.442695, %v2420_v8 }
 0x209   :  { %v1922_v13 = vpop.eup %1921  ;;  %v1334_v14 = vadd.f32 %v1333_v58, %v1303_v3  ;;  %1939 = vrcp.f32 %v1215_v22  ;;  %v1214_v49 = vadd.f32 1.0, %v1920_v46 }
 0x20a   :  { %v1924_v62 = vpop.eup %1923  ;;  %v1217_v43 = vadd.f32 1.0, %v1922_v13  ;;  %1941 = vpow2.f32 %v1531_v2 }
 0x20b   :  { %v1335_v24 = vadd.f32 %v1334_v14, %v1304_v55  ;;  %1943 = vrcp.f32 %v1214_v49  ;;  %v1216_v50 = vadd.f32 1.0, %v1924_v62  ;;  %v700_v55 = vrot.slane %v2369_v32, 4 }
 0x20c   :  { %v1926_v26 = vpop.eup %1925  ;;  %1945 = vrcp.f32 %v1217_v43 }
 0x20d   :  { %v1928_v48 = vpop.eup %1927  ;;  %v1336_v37 = vadd.f32 %v1335_v24, %v1305_v47  ;;  %1947 = vrcp.f32 %v1216_v50  ;;  %v1307_v38 = vmul.f32 %v1926_v26, %v2359_v34  ;;  %v701_v47 = vadd.f32 %v700_v55, %v2369_v32 }
 0x20e   :  { %v1930_v5 = vpop.eup %1929  ;;  %v1306_v27 = vmul.f32 %v1928_v48, %v2364_v29  ;;  %1949 = vpow2.f32 %v1534_v21 }
 0x20f   :  { %v1932_v30 = vpop.eup %1931  ;;  %v1219_v7 = vadd.f32 1.0, %v1930_v5  ;;  %1951 = vpow2.f32 %v1533_v63  ;;  %v702_v24 = vrot.slane %v701_v47, 2 }
 0x210   :  { %v1934_v36 = vpop.eup %1933  ;;  %v1337_v35 = vadd.f32 %v1336_v37, %v1306_v27  ;;  %v1309_v10 = vmul.f32 %v1932_v30, %v2372_v53 }
 0x211   :  { %v1936_v42 = vpop.eup %1935  ;;  %v1308_v16 = vmul.f32 %v1934_v36, %v2375_v41  ;;  %1953 = vrcp.f32 %v1219_v7  ;;  %v1357_v7 = vld [vmem:[#allocation2] sm:$0x3] }
 0x212   :  { %v1938_v39 = vpop.eup %1937  ;;  %v1338_v33 = vadd.f32 %v1337_v35, %v1307_v38  ;;  %v1218_v0 = vadd.f32 1.0, %v1936_v42 }
 0x213   :  { %v1940_v12 = vpop.eup %1939  ;;  %v1221_v40 = vadd.f32 1.0, %v1938_v39 }
 0x214   :  { %v1942_v56 = vpop.eup %1941  ;;  %v1339_v29 = vadd.f32 %v1338_v33, %v1308_v16  ;;  %1955 = vrcp.f32 %v1218_v0  ;;  %v1311_v19 = vmul.f32 %v1940_v12, %v2380_v57 }
 0x215   :  { %v1944_v25 = vpop.eup %1943  ;;  %v1220_v9 = vadd.f32 1.0, %v1942_v56 }
 0x216   :  { %v1946_v51 = vpop.eup %1945  ;;  %v1310_v34 = vmul.f32 %v1944_v25, %v2384_v60  ;;  %v1340_v52 = vadd.f32 %v1339_v29, %v1309_v10 }
 0x217   :  { %v1948_v28 = vpop.eup %1947  ;;  %1957 = vrcp.f32 %v1220_v9  ;;  %v1313_v61 = vmul.f32 %v1946_v51, %v2390_v44 }
 0x218   :  { %v1950_v41 = vpop.eup %1949  ;;  %v1341_v23 = vadd.f32 %v1340_v52, %v1310_v34  ;;  %v1312_v59 = vmul.f32 %v1948_v28, %v2393_v17  ;;  %1959 = vrcp.f32 %v1221_v40 }
 0x219   :  { %v1952_v20 = vpop.eup %1951  ;;  %v1223_v53 = vadd.f32 1.0, %v1950_v41 }
 0x21a   :  { %v1342_v31 = vadd.f32 %v1341_v23, %v1311_v19  ;;  %v1222_v45 = vadd.f32 1.0, %v1952_v20 }
 0x21b   :  { %1961 = vrcp.f32 %v1223_v53  ;;  %v1954_v60 = vpop.eup %1953 }
 0x21c   :  { %v1343_v3 = vadd.f32 %v1342_v31, %v1312_v59  ;;  %1963 = vrcp.f32 %v1222_v45  ;;  %v1315_v57 = vmul.f32 %v1954_v60, %v2402_v15 }
 0x21e   :  { %v1956_v2 = vpop.eup %1955  ;;  %v1344_v4 = vadd.f32 %v1343_v3, %v1313_v61 }
 0x21f   :  { %v1314_v6 = vmul.f32 %v1956_v2, %v2405_v11 }
 0x221   :  { %v1958_v58 = vpop.eup %1957  ;;  %v1345_v22 = vadd.f32 %v1344_v4, %v1314_v6 }
 0x222   :  { %v1960_v17 = vpop.eup %1959  ;;  %v1316_v46 = vmul.f32 %v1958_v58, %v2412_v54  ;;  %v703_v54 = vadd.f32 %v702_v24, %v701_v47 }
 0x223   :  { %v1346_v13 = vadd.f32 %v1345_v22, %v1315_v57  ;;  %v1317_v44 = vmul.f32 %v1960_v17, %v2410_v1 }
 0x224   :  { %v704_v37 = vrot.slane %v703_v54, 1 }
 0x225   :  { %v1962_v14 = vpop.eup %1961  ;;  %v1347_v49 = vadd.f32 %v1346_v13, %v1316_v46 }
 0x226   :  { %v1964_v62 = vpop.eup %1963  ;;  %v1319_v21 = vmul.f32 %v1962_v14, %v2418_v18  ;;  %v705_v1 = vadd.f32 %v704_v37, %v703_v54  ;;  %v1535_v18 = vld [vmem:[%s2466_s3] ss:$0 sm:$0xff] }
 0x227   :  { %v1318_v43 = vmul.f32 %v1964_v62, %v2420_v8  ;;  %v1348_v11 = vadd.f32 %v1347_v49, %v1317_v44 }
 0x229   :  { %v1349_v15 = vadd.f32 %v1348_v11, %v1318_v43 }
 0x22b   :  { %v1350_v50 = vadd.f32 %v1349_v15, %v1319_v21 }
 0x22d   :  { %v1351_v63 = vrot.slane %v1350_v50, 4 }
 0x22f   :  { %v1352_v26 = vadd.f32 %v1351_v63, %v1350_v50 }
 0x231   :  { %v1353_v48 = vrot.slane %v1352_v26, 2 }
 0x233   :  { %v1354_v5 = vadd.f32 %v1353_v48, %v1352_v26 }
 0x235   :  { %v1355_v27 = vrot.slane %v1354_v5, 1 }
 0x237   :  { %v1356_v30 = vadd.f32 %v1355_v27, %v1354_v5 }
 0x239   :  { %v1359_v32 = vsel %vm1358_vm2, %v705_v1, %v1356_v30 }
 0x23a   :  { %v1360_v36 = vadd.f32 %v1359_v32, %v1357_v7 }
 0x23c   :  { %1361 = vst [vmem:[#allocation2] sm:$0x3] %v1360_v36 }
 0x243   :  { %v1365_v8 = vld [vmem:[#allocation2] sm:$0x3] }
 0x244   :  { %v1366_v38 = vmul.f32 0.00390625, %v1365_v8 }
 0x246   :  { %v1375_v35 = vmul.f32 %v1535_v18, %v1366_v38  ;;  %1367 = vst [vmem:[#allocation7] sm:$0x3] %v1366_v38 }
 0x248   :  { %v1377_v42 = vsel %vm1376_vm3, %v1375_v35, 0.0 }
 0x249   :  { %1378 = vadd.xlane.f32.xlu0 %v1377_v42 }
 0x24a   :  { %1999 = shalt.err (!%p1996_p12)
}
 0x24b   :  { %s2000_s3 = scalar_lea.hbm %s2468_s5, 32 }
 0x24c   :  { %p2001_p13 = scmp.ne.s32.totalorder %s2468_s5, %s2000_s3  ;;  %p2004_p0 = scmp.lt.u32.totalorder %s2000_s3, %s2468_s5 }
 0x24e   :  { %p2006_p1 = pnand %p2004_p0, %p2001_p13 }
 0x250   :  { %2009 = shalt.err (!%p2006_p1)
}
 0x251   :  { %1394 = dma.vmem_to_hbm [thread:$0]  %s1392_s17, 32, %s2468_s5, [#allocation6]   ;;  %v1381_v16 = vstv %s2467_s4  ;;  %vm1383_vm4 = vcmask 1024  }
 0x2d6   :  { %v1379_v39 = vpop.xlane.xlu0 %1378 }
 0x2d7   :  { %v1382_v33 = vadd.f32 %v1381_v16, %v1379_v39 }
 0x2d9   :  { %1384 = vst.msk [vmem:[%s2469_s6] sm:$0x3] %vm1383_vm4, %v1382_v33 }
 0x2da   :  { %2012 = dma.done.wait [#allocation6], 32  }
 0x2db   :  { %2013 = vsyncadd [#allocation6], 4294967264 }
 0x2dc   :  { %1402 = vsyncpa [#allocation5], 1 }
 0x2dd   :  { %1403 = vsyncpa [#allocation6], 1 }

</bundles_post_ra>
